<compile_context>
chip_gen: v7x
topology: tpu7x:2x2x1
jax: 0.10.0
libtpu: 0.0.40
codegen_flags: <defaults>
</compile_context>

<pallas_src>
import functools

import jax
import jax.numpy as jnp
from jax.experimental import pallas as pl
from jax.experimental.pallas import tpu as pltpu


# ---------------------------------------------------------------- fused MLP
def _mlp_pair_kernel(y_ref, gw1_ref, gb1_ref, gw2_ref, gb2_ref,
                     bw1_ref, bb1_ref, bw2_ref, bb2_ref, dg_ref, db_ref):
    # y: (B, 128); w1: (128, 2C); b1: (1, 2C); w2: (2C, C); b2: (1, C)
    y = y_ref[...]
    hg = jnp.maximum(
        jnp.dot(y, gw1_ref[...], preferred_element_type=jnp.float32) + gb1_ref[...], 0.0)
    dg_ref[...] = (
        jnp.dot(hg, gw2_ref[...], preferred_element_type=jnp.float32) + gb2_ref[...]
    ).astype(dg_ref.dtype)
    hb = jnp.maximum(
        jnp.dot(y, bw1_ref[...], preferred_element_type=jnp.float32) + bb1_ref[...], 0.0)
    db_ref[...] = (
        jnp.dot(hb, bw2_ref[...], preferred_element_type=jnp.float32) + bb2_ref[...]
    ).astype(db_ref.dtype)


def mlp_pair_forward(y, params):
    """One launch, one y DMA, both conditioning MLPs."""
    B = y.shape[0]
    C = params["g_w2"].shape[1]
    dg, db = pl.pallas_call(
        _mlp_pair_kernel,
        out_shape=(jax.ShapeDtypeStruct((B, C), jnp.float32),
                   jax.ShapeDtypeStruct((B, C), jnp.float32)),
    )(y,
      params["g_w1"], params["g_b1"].reshape(1, -1),
      params["g_w2"], params["g_b2"].reshape(1, -1),
      params["b_w1"], params["b_b1"].reshape(1, -1),
      params["b_w2"], params["b_b2"].reshape(1, -1))
    return dg, db


# --------------------------------------------------- group-BN: stats kernel
def _stats_kernel(x_ref, dg_ref, db_ref, a_ref, b_ref, sum_sc, sq_sc, *, eps, n_red):
    # x:  (n, C, hw_tile)   dg/db: (n, C)   a/b out: (n, C)   scratch: (1, C)
    t = pl.program_id(1)

    @pl.when(t == 0)
    def _():
        sum_sc[...] = jnp.zeros_like(sum_sc)
        sq_sc[...] = jnp.zeros_like(sq_sc)

    x = x_ref[...].astype(jnp.float32)
    # single pass: lane-axis reduce first (XLU), then across samples (vreg adds)
    s = jnp.sum(x, axis=2)                                   # (n, C)
    sq = jnp.sum(x * x, axis=2)                              # (n, C)
    sum_sc[...] += jnp.sum(s, axis=0, keepdims=True)         # (1, C)
    sq_sc[...] += jnp.sum(sq, axis=0, keepdims=True)         # (1, C)

    @pl.when(t == pl.num_programs(1) - 1)
    def _():
        mean = sum_sc[...] * (1.0 / n_red)                              # (1, C)
        var = (sq_sc[...] - n_red * mean * mean) / (n_red - 1.0)        # unbiased (torch.var)
        rstd = jax.lax.rsqrt(var + eps)                                 # (1, C)
        a = dg_ref[...].astype(jnp.float32) * rstd                      # (n, C)
        b = db_ref[...].astype(jnp.float32) - mean * a                  # (n, C)
        a_ref[...] = a.astype(a_ref.dtype)
        b_ref[...] = b.astype(b_ref.dtype)


# --------------------------------------------------- group-BN: apply kernel
def _apply_kernel(x_ref, a_ref, b_ref, o_ref):
    # folded scale/shift: o = x * a + b   (2 VPU ops / element)
    a = a_ref[...][..., None]                                # (n, C, 1)
    b = b_ref[...][..., None]
    o_ref[...] = (x_ref[...].astype(jnp.float32) * a + b).astype(o_ref.dtype)


def _pick_hw_tile(n, C, HW, itemsize, budget_bytes):
    """Largest multiple-of-128 divisor of HW whose (n, C, tile) block fits budget.

    Falls back to the full HW extent (always a legal block shape) when HW is not
    a multiple of 128.
    """
    if HW % 128 != 0:
        return HW
    best = 128
    t = 128
    while t <= HW:
        if HW % t == 0 and n * C * t * itemsize <= budget_bytes:
            best = t
        t += 128
    return best


def gbn_forward(x_nchw, delta_gamma, delta_beta, G, eps=1e-5, max_block_bytes=4 << 20):
    N, C, H, W = x_nchw.shape
    n = N // G
    HW = H * W
    xg = x_nchw.reshape(G, n, C, HW)
    dg = delta_gamma.reshape(G, n, C).astype(jnp.float32)
    db = delta_beta.reshape(G, n, C).astype(jnp.float32)

    itemsize = jnp.dtype(x_nchw.dtype).itemsize
    hw_tile = _pick_hw_tile(n, C, HW, itemsize, max_block_bytes)
    n_tiles = HW // hw_tile

    x_spec = pl.BlockSpec((pl.Squeezed(), n, C, hw_tile), lambda g, t: (g, 0, 0, t))
    vec_spec = pl.BlockSpec((pl.Squeezed(), n, C), lambda g, t: (g, 0, 0))

    # Pass 1: per-(group, channel) stats folded with the conditional affine into
    # per-(group, sample, channel) scale a and shift b.
    a, b = pl.pallas_call(
        functools.partial(_stats_kernel, eps=eps, n_red=float(n * HW)),
        out_shape=(jax.ShapeDtypeStruct((G, n, C), jnp.float32),
                   jax.ShapeDtypeStruct((G, n, C), jnp.float32)),
        grid=(G, n_tiles),
        in_specs=[x_spec, vec_spec, vec_spec],
        out_specs=(vec_spec, vec_spec),
        scratch_shapes=[pltpu.VMEM((1, C), jnp.float32),
                        pltpu.VMEM((1, C), jnp.float32)],
        compiler_params=pltpu.CompilerParams(
            dimension_semantics=("parallel", "arbitrary")),
    )(xg, dg, db)

    # Pass 2: o = x * a + b, tiled lane-dense over HW, both grid axes parallel.
    out = pl.pallas_call(
        _apply_kernel,
        out_shape=jax.ShapeDtypeStruct((G, n, C, HW), x_nchw.dtype),
        grid=(G, n_tiles),
        in_specs=[x_spec, vec_spec, vec_spec],
        out_specs=x_spec,
        compiler_params=pltpu.CompilerParams(
            dimension_semantics=("parallel", "parallel")),
    )(xg, a, b)
    return out.reshape(N, C, H, W)


# --------------------------------------------------------------- full module
def gcbn_forward(x, y, params, G, eps=1e-5, max_block_bytes=4 << 20):
    """x: (N, C, H, W) with N = G * batchsize.  y: (G * batchsize, 128)."""
    delta_gamma, delta_beta = mlp_pair_forward(y, params)
    return gbn_forward(x, delta_gamma, delta_beta, G, eps=eps,
                       max_block_bytes=max_block_bytes)


# ---------------------------------------------------------------- reference
def gcbn_reference(x, y, params, G, eps=1e-5):
    N, C, H, W = x.shape
    n = N // G

    def mlp(yv, w1, b1, w2, b2):
        h = jnp.maximum(yv @ w1 + b1, 0.0)
        return h @ w2 + b2

    dg = mlp(y, params["g_w1"], params["g_b1"], params["g_w2"], params["g_b2"])
    db = mlp(y, params["b_w1"], params["b_b1"], params["b_w2"], params["b_b2"])
    dg = dg.reshape(G, n, C, 1, 1)
    db = db.reshape(G, n, C, 1, 1)

    xg = x.reshape(G, n, C, H, W)
    mean = jnp.mean(xg, axis=(1, 3, 4), keepdims=True)
    var = jnp.var(xg, axis=(1, 3, 4), keepdims=True, ddof=1)  # torch.var unbiased
    x_hat = (xg - mean) / jnp.sqrt(var + eps)
    out = x_hat * dg + db
    return out.reshape(N, C, H, W)


def init_params(key, num_features):
    inter = 2 * num_features
    in_dim = 128
    keys = jax.random.split(key, 8)

    def linear(kw, kb, fan_in, fan_out):
        bound = 1.0 / jnp.sqrt(fan_in)
        w = jax.random.uniform(kw, (fan_in, fan_out), jnp.float32, -bound, bound)
        b = jax.random.uniform(kb, (fan_out,), jnp.float32, -bound, bound)
        return w, b

    g_w1, g_b1 = linear(keys[0], keys[1], in_dim, inter)
    g_w2, g_b2 = linear(keys[2], keys[3], inter, num_features)
    b_w1, b_b1 = linear(keys[4], keys[5], in_dim, inter)
    b_w2, b_b2 = linear(keys[6], keys[7], inter, num_features)
    return dict(g_w1=g_w1, g_b1=g_b1, g_w2=g_w2, g_b2=g_b2,
                b_w1=b_w1, b_b1=b_b1, b_w2=b_w2, b_b2=b_b2)


if __name__ == "__main__":
    # opt.micro_in_macro = G, opt.batchsize = per-group batch
    G = 2
    batchsize = 2
    num_features = 8
    H = W = 16                      # H*W = 256 -> lane-dense (multiple of 128)
    N_total = G * batchsize

    key = jax.random.PRNGKey(0)
    kx, ky, kp = jax.random.split(key, 3)

    x = jax.random.normal(kx, (N_total, num_features, H, W), jnp.float32)
    y = jax.random.normal(ky, (N_total, 128), jnp.float32)
    params = init_params(kp, num_features)

    ref = gcbn_reference(x, y, params, G)

    # 1) default tile budget: one lane-dense 256-wide HW tile per group
    out = jax.block_until_ready(gcbn_forward(x, y, params, G))
    assert out.shape == (N_total, num_features, H, W)
    assert jnp.allclose(out, ref, atol=1e-4, rtol=1e-4), float(jnp.max(jnp.abs(out - ref)))

    # 2) small tile budget: forces two 128-wide HW tiles per group, exercising
    #    the multi-tile stats accumulation + tiled apply path.
    small_budget = batchsize * num_features * 128 * 4
    out2 = jax.block_until_ready(
        gcbn_forward(x, y, params, G, max_block_bytes=small_budget))
    assert jnp.allclose(out2, ref, atol=1e-4, rtol=1e-4), float(jnp.max(jnp.abs(out2 - ref)))

    print("KERNEL_OK")
</pallas_src>

<mosaic_0001>
module attributes {stable_mosaic.version = 11 : i64} {
  func.func @_mlp_pair_kernel(%arg0: memref<4x128xf32, #tpu.memory_space<vmem>>, %arg1: memref<128x16xf32, #tpu.memory_space<vmem>>, %arg2: memref<1x16xf32, #tpu.memory_space<vmem>>, %arg3: memref<16x8xf32, #tpu.memory_space<vmem>>, %arg4: memref<1x8xf32, #tpu.memory_space<vmem>>, %arg5: memref<128x16xf32, #tpu.memory_space<vmem>>, %arg6: memref<1x16xf32, #tpu.memory_space<vmem>>, %arg7: memref<16x8xf32, #tpu.memory_space<vmem>>, %arg8: memref<1x8xf32, #tpu.memory_space<vmem>>, %arg9: memref<4x8xf32, #tpu.memory_space<vmem>>, %arg10: memref<4x8xf32, #tpu.memory_space<vmem>>) attributes {dimension_semantics = [], scalar_prefetch = 0 : i64, scratch_operands = 0 : i64, tpu.core_type = #tpu.core_type<tc>} {
    %c0 = arith.constant 0 : index
    %c0_0 = arith.constant 0 : index
    %0 = vector.load %arg0[%c0, %c0_0] : memref<4x128xf32, #tpu.memory_space<vmem>>, vector<4x128xf32>
    %c0_1 = arith.constant 0 : index
    %c0_2 = arith.constant 0 : index
    %1 = vector.load %arg1[%c0_1, %c0_2] : memref<128x16xf32, #tpu.memory_space<vmem>>, vector<128x16xf32>
    %cst = arith.constant dense<0.000000e+00> : vector<4x16xf32>
    %2 = tpu.matmul %0, %1, %cst {dimension_numbers = #tpu.dot_dimension_numbers<[1], [0], [0], [1], [0, 0, 1, 1], [], []>} : vector<4x128xf32>, vector<128x16xf32>, vector<4x16xf32> -> vector<4x16xf32>
    %c0_3 = arith.constant 0 : index
    %c0_4 = arith.constant 0 : index
    %3 = vector.load %arg2[%c0_3, %c0_4] : memref<1x16xf32, #tpu.memory_space<vmem>>, vector<1x16xf32>
    %4 = vector.broadcast %3 : vector<1x16xf32> to vector<4x16xf32>
    %5 = arith.addf %2, %4 : vector<4x16xf32>
    %cst_5 = arith.constant 0.000000e+00 : f32
    %6 = vector.broadcast %cst_5 : f32 to vector<4x16xf32>
    %7 = arith.maximumf %5, %6 : vector<4x16xf32>
    %c0_6 = arith.constant 0 : index
    %c0_7 = arith.constant 0 : index
    %8 = vector.load %arg3[%c0_6, %c0_7] : memref<16x8xf32, #tpu.memory_space<vmem>>, vector<16x8xf32>
    %cst_8 = arith.constant dense<0.000000e+00> : vector<4x8xf32>
    %9 = tpu.matmul %7, %8, %cst_8 {dimension_numbers = #tpu.dot_dimension_numbers<[1], [0], [0], [1], [0, 0, 1, 1], [], []>} : vector<4x16xf32>, vector<16x8xf32>, vector<4x8xf32> -> vector<4x8xf32>
    %c0_9 = arith.constant 0 : index
    %c0_10 = arith.constant 0 : index
    %10 = vector.load %arg4[%c0_9, %c0_10] : memref<1x8xf32, #tpu.memory_space<vmem>>, vector<1x8xf32>
    %11 = vector.broadcast %10 : vector<1x8xf32> to vector<4x8xf32>
    %12 = arith.addf %9, %11 : vector<4x8xf32>
    %c0_11 = arith.constant 0 : index
    %c0_12 = arith.constant 0 : index
    %13 = vector.load %arg9[%c0_11, %c0_12] : memref<4x8xf32, #tpu.memory_space<vmem>>, vector<4x8xf32>
    tpu.vector_store %arg9[%c0_11, %c0_12], %12 {strides = array<i32>} : memref<4x8xf32, #tpu.memory_space<vmem>>, vector<4x8xf32>,
    %c0_13 = arith.constant 0 : index
    %c0_14 = arith.constant 0 : index
    %14 = vector.load %arg5[%c0_13, %c0_14] : memref<128x16xf32, #tpu.memory_space<vmem>>, vector<128x16xf32>
    %cst_15 = arith.constant dense<0.000000e+00> : vector<4x16xf32>
    %15 = tpu.matmul %0, %14, %cst_15 {dimension_numbers = #tpu.dot_dimension_numbers<[1], [0], [0], [1], [0, 0, 1, 1], [], []>} : vector<4x128xf32>, vector<128x16xf32>, vector<4x16xf32> -> vector<4x16xf32>
    %c0_16 = arith.constant 0 : index
    %c0_17 = arith.constant 0 : index
    %16 = vector.load %arg6[%c0_16, %c0_17] : memref<1x16xf32, #tpu.memory_space<vmem>>, vector<1x16xf32>
    %17 = vector.broadcast %16 : vector<1x16xf32> to vector<4x16xf32>
    %18 = arith.addf %15, %17 : vector<4x16xf32>
    %cst_18 = arith.constant 0.000000e+00 : f32
    %19 = vector.broadcast %cst_18 : f32 to vector<4x16xf32>
    %20 = arith.maximumf %18, %19 : vector<4x16xf32>
    %c0_19 = arith.constant 0 : index
    %c0_20 = arith.constant 0 : index
    %21 = vector.load %arg7[%c0_19, %c0_20] : memref<16x8xf32, #tpu.memory_space<vmem>>, vector<16x8xf32>
    %cst_21 = arith.constant dense<0.000000e+00> : vector<4x8xf32>
    %22 = tpu.matmul %20, %21, %cst_21 {dimension_numbers = #tpu.dot_dimension_numbers<[1], [0], [0], [1], [0, 0, 1, 1], [], []>} : vector<4x16xf32>, vector<16x8xf32>, vector<4x8xf32> -> vector<4x8xf32>
    %c0_22 = arith.constant 0 : index
    %c0_23 = arith.constant 0 : index
    %23 = vector.load %arg8[%c0_22, %c0_23] : memref<1x8xf32, #tpu.memory_space<vmem>>, vector<1x8xf32>
    %24 = vector.broadcast %23 : vector<1x8xf32> to vector<4x8xf32>
    %25 = arith.addf %22, %24 : vector<4x8xf32>
    %c0_24 = arith.constant 0 : index
    %c0_25 = arith.constant 0 : index
    %26 = vector.load %arg10[%c0_24, %c0_25] : memref<4x8xf32, #tpu.memory_space<vmem>>, vector<4x8xf32>
    tpu.vector_store %arg10[%c0_24, %c0_25], %25 {strides = array<i32>} : memref<4x8xf32, #tpu.memory_space<vmem>>, vector<4x8xf32>,
    return
  }
}

</mosaic_0001>

<bundles_post_ra>
// kernel: tpu_custom_call.1
= control target key start
LH: loop header
LB: loop body
LE: loop exit
PB: predicated region body
PF: predicated region fallthrough
CT: control target
= control target key end

     0   :  { %16 = vsyncpa [#allocation3], 0  ;;  %v658_v3 = vmov 0.0|0.0   ;;  %vm659_vm0 = vmmov 0   ;;  %v660_v6 = vmov 0.0   ;;  %s891_s0 = inlined_call_operand.vmem [shape: f32[4,128], index: 0, kind: input, shape index: {}]   ;;  %s892_s1 = inlined_call_operand.vmem [shape: f32[128,16], index: 1, kind: input, shape index: {}]   ;;  %s893_s2 = inlined_call_operand.vmem [shape: f32[1,16], index: 2, kind: input, shape index: {}]   ;;  %s894_s3 = inlined_call_operand.vmem [shape: f32[16,8], index: 3, kind: input, shape index: {}]   ;;  %s895_s4 = inlined_call_operand.vmem [shape: f32[1,8], index: 4, kind: input, shape index: {}]   ;;  %s896_s5 = inlined_call_operand.vmem [shape: f32[128,16], index: 5, kind: input, shape index: {}]   ;;  %s897_s6 = inlined_call_operand.vmem [shape: f32[1,16], index: 6, kind: input, shape index: {}]   ;;  %s898_s7 = inlined_call_operand.vmem [shape: f32[16,8], index: 7, kind: input, shape index: {}]   ;;  %s899_s8 = inlined_call_operand.vmem [shape: f32[1,8], index: 8, kind: input, shape index: {}]   ;;  %s900_s9 = inlined_call_operand.hbm [shape: f32[4,8], index: 9, kind: output, shape index: {0}]   ;;  %s901_s10 = inlined_call_operand.hbm [shape: f32[4,8], index: 10, kind: output, shape index: {1}]  }
   0x1   :  { %v37_v0 = vld [vmem:[%s892_s1] sm:$0xff]  ;;  %v38_v1 = vld [vmem:[%s892_s1 + $0x8] sm:$0xff]  ;;  %v39_v2 = vld [vmem:[%s892_s1 + $0x10] sm:$0xff]  ;;  %551 = vmatprep.subr.bf16.mxu0 %v658_v3  ;;  %499 = vmatprep.mubr.msk.f32.mxu0 %vm659_vm0, %v660_v6 }
   0x2   :  { %v552_v4 = vpack.c.bf16 %v38_v1, %v37_v0  ;;  %v40_v5 = vld [vmem:[%s892_s1 + $0x18] sm:$0xff]  ;;  %575 = vmatprep.subr.bf16.mxu1 %v658_v3  ;;  %506 = vmatprep.mubr.msk.f32.mxu1 %vm659_vm0, %v660_v6  ;;  %v41_v8 = vld [vmem:[%s892_s1 + $0x20] sm:$0xff]  ;;  %v42_v9 = vld [vmem:[%s892_s1 + $0x28] sm:$0xff] }
   0x3   :  { %v555_v7 = vpack.c.bf16 %v40_v5, %v39_v2 }
   0x4   :  { %553 = vmatpush3.bf16.msra.mxu0 %v552_v4 }
   0x5   :  { %554 = vmatprep.subr.bf16.mxu0 %v658_v3 }
   0x6   :  { %17 = vsyncpa [#allocation5], 0  ;;  %v558_v10 = vpack.c.bf16 %v42_v9, %v41_v8  ;;  %v43_v11 = vld [vmem:[%s892_s1 + $0x30] sm:$0xff]  ;;  %v44_v12 = vld [vmem:[%s892_s1 + $0x38] sm:$0xff]  ;;  %vm140_vm1 = vcmask 130048   ;;  %vm214_vm2 = vcmask 60416  }
   0x7   :  { %v561_v13 = vpack.c.bf16 %v44_v12, %v43_v11  ;;  %v45_v14 = vld [vmem:[%s892_s1 + $0x40] sm:$0xff]  ;;  %v46_v15 = vld [vmem:[%s892_s1 + $0x48] sm:$0xff]  ;;  %v47_v17 = vld [vmem:[%s892_s1 + $0x50] sm:$0xff] }
   0x8   :  { %556 = vmatpush3.bf16.msra.mxu0 %v555_v7  ;;  %v564_v16 = vpack.c.bf16 %v46_v15, %v45_v14  ;;  %v48_v18 = vld [vmem:[%s892_s1 + $0x58] sm:$0xff]  ;;  %v49_v20 = vld [vmem:[%s892_s1 + $0x60] sm:$0xff]  ;;  %v50_v21 = vld [vmem:[%s892_s1 + $0x68] sm:$0xff] }
   0x9   :  { %557 = vmatprep.subr.bf16.mxu0 %v658_v3  ;;  %v567_v19 = vpack.c.bf16 %v48_v18, %v47_v17  ;;  %v570_v22 = vpack.c.bf16 %v50_v21, %v49_v20  ;;  %v51_v23 = vld [vmem:[%s892_s1 + $0x70] sm:$0xff]  ;;  %v52_v24 = vld [vmem:[%s892_s1 + $0x78] sm:$0xff]  ;;  %v36_v26 = vld [vmem:[%s891_s0] sm:$0xf] }
   0xa   :  { %v573_v25 = vpack.c.bf16 %v52_v24, %v51_v23  ;;  %v131_v27 = vld [vmem:[%s894_s3] sm:$0xff]  ;;  %v132_v28 = vld [vmem:[%s894_s3 + $0x8] sm:$0xff]  ;;  %v218_v38 = vld [vmem:[%s896_s5 + $0x10] sm:$0xff] }
   0xb   :  { %v576_v29 = vpack.c.bf16 %v132_v28, %v131_v27  ;;  %v421_v30 = vld [vmem:[%s893_s2] ss:$0 sm:$0xff]  ;;  %v217_v32 = vld [vmem:[%s896_s5 + $0x8] sm:$0xff]  ;;  %v219_v39 = vld [vmem:[%s896_s5 + $0x18] sm:$0xff] }
   0xc   :  { %559 = vmatpush3.bf16.msra.mxu0 %v558_v10  ;;  %v216_v31 = vld [vmem:[%s896_s5] sm:$0xff]  ;;  %v582_v40 = vpack.c.bf16 %v219_v39, %v218_v38  ;;  %v221_v42 = vld [vmem:[%s896_s5 + $0x28] sm:$0xff]  ;;  %v222_v44 = vld [vmem:[%s896_s5 + $0x30] sm:$0xff] }
   0xd   :  { %560 = vmatprep.subr.bf16.mxu0 %v658_v3  ;;  %577 = vmatpush3.bf16.msra.mxu1 %v576_v29  ;;  %v579_v36 = vpack.c.bf16 %v217_v32, %v216_v31  ;;  %v220_v41 = vld [vmem:[%s896_s5 + $0x20] sm:$0xff]  ;;  %v223_v45 = vld [vmem:[%s896_s5 + $0x38] sm:$0xff]  ;;  %v225_v48 = vld [vmem:[%s896_s5 + $0x48] sm:$0xff] }
   0xe   :  { %578 = vmatprep.subr.bf16.mxu1 %v658_v3  ;;  %v585_v43 = vpack.c.bf16 %v221_v42, %v220_v41  ;;  %v588_v46 = vpack.c.bf16 %v223_v45, %v222_v44  ;;  %v224_v47 = vld [vmem:[%s896_s5 + $0x40] sm:$0xff]  ;;  %v226_v50 = vld [vmem:[%s896_s5 + $0x50] sm:$0xff]  ;;  %v227_v51 = vld [vmem:[%s896_s5 + $0x58] sm:$0xff] }
   0xf   :  { %v591_v49 = vpack.c.bf16 %v225_v48, %v224_v47  ;;  %v594_v52 = vpack.c.bf16 %v227_v51, %v226_v50  ;;  %v228_v53 = vld [vmem:[%s896_s5 + $0x60] sm:$0xff]  ;;  %v229_v54 = vld [vmem:[%s896_s5 + $0x68] sm:$0xff]  ;;  %v230_v56 = vld [vmem:[%s896_s5 + $0x70] sm:$0xff] }
  0x10   :  { %562 = vmatpush3.bf16.msra.mxu0 %v561_v13  ;;  %v597_v55 = vpack.c.bf16 %v229_v54, %v228_v53  ;;  %v231_v57 = vld [vmem:[%s896_s5 + $0x78] sm:$0xff]  ;;  %v310_v59 = vld [vmem:[%s898_s7] sm:$0xff]  ;;  %v311_v60 = vld [vmem:[%s898_s7 + $0x8] sm:$0xff]  ;;  %s661_s7 = smov [#allocation2]  }
  0x11   :  { %563 = vmatprep.subr.bf16.mxu0 %v658_v3  ;;  %v600_v58 = vpack.c.bf16 %v231_v57, %v230_v56  ;;  %v603_v61 = vpack.c.bf16 %v311_v60, %v310_v59  ;;  %v422_v62 = vld [vmem:[%s895_s4] ss:$0 sm:$0xff]  ;;  %s399_s24 = sshll.u32 %s661_s7, 4  ;;  %s400_s24 = int_to_ptr.vmem [resolvable:$true] %s399_s24 }
  0x12   :  { %v424_v2 = vld [vmem:[%s897_s6] ss:$0 sm:$0xff]  ;;  %s610_s4 = scalar_lea.vmem %s400_s24, 64  ;;  %p615_p1 = scmp.lt.s32.totalorder %s400_s24, %s400_s24 }
  0x13   :  { %p611_p0 = scmp.ne.s32.totalorder %s400_s24, %s610_s4  ;;  %p616_p2 = scmp.lt.s32.totalorder %s610_s4, %s610_s4 }
  0x14   :  { %565 = vmatpush3.bf16.msra.mxu0 %v564_v16 }
  0x15   :  { %566 = vmatprep.subr.bf16.mxu0 %v658_v3  ;;  %p617_p3 = por %p616_p2, %p615_p1 }
  0x17   :  { %p618_p4 = pnand %p617_p3, %p611_p0 }
  0x18   :  { %568 = vmatpush3.bf16.msra.mxu0 %v567_v19 }
  0x19   :  { %569 = vmatprep.subr.bf16.mxu0 %v658_v3 }
  0x1c   :  { %571 = vmatpush3.bf16.msra.mxu0 %v570_v22 }
  0x1d   :  { %572 = vmatprep.subr.bf16.mxu0 %v658_v3 }
  0x20   :  { %574 = vmatpush3.bf16.msra.mxu0 %v573_v25 }
  0x21   :  { %602 = vmatprep.subr.bf16.mxu0 %v658_v3 }
  0x23   :  { %500 = vmatmul.mubr.f32.vlgmr.msra.gmra.mrb[0].mxu0 %v36_v26 }
  0x24   :  { %548 = vmatprep.mubr.msk.f32.mxu0 %vm659_vm0, %v660_v6  ;;  %604 = vmatpush3.bf16.msra.mxu0 %v603_v61 }
  0xf6   :  { %v126_v33 = vpop.f32.mrb[0].mxu0 }
  0xf7   :  { %v127_v34 = vadd.f32 %v421_v30, %v126_v33  ;;  %v501_v35 = vpop.f32.mrb[1].mxu0 }
  0xf9   :  { %v130_v37 = vmax.f32 %v127_v34, 0.0 }
  0xfb   :  { %507 = vmatmul.mubr.msk.f32.vlgmr.msra.gmra.mrb[0].mxu1 %vm140_vm1, %v130_v37 }
  0xfc   :  { %580 = vmatpush3.bf16.msra.mxu1 %v579_v36  ;;  %541 = vmatprep.mubr.msk.f32.mxu1 %vm659_vm0, %v660_v6 }
  0xfd   :  { %581 = vmatprep.subr.bf16.mxu1 %v658_v3 }
 0x100   :  { %583 = vmatpush3.bf16.msra.mxu1 %v582_v40 }
 0x101   :  { %584 = vmatprep.subr.bf16.mxu1 %v658_v3 }
 0x104   :  { %586 = vmatpush3.bf16.msra.mxu1 %v585_v43 }
 0x105   :  { %587 = vmatprep.subr.bf16.mxu1 %v658_v3 }
 0x108   :  { %589 = vmatpush3.bf16.msra.mxu1 %v588_v46 }
 0x109   :  { %590 = vmatprep.subr.bf16.mxu1 %v658_v3 }
 0x10c   :  { %592 = vmatpush3.bf16.msra.mxu1 %v591_v49 }
 0x10d   :  { %593 = vmatprep.subr.bf16.mxu1 %v658_v3 }
 0x110   :  { %595 = vmatpush3.bf16.msra.mxu1 %v594_v52 }
 0x111   :  { %596 = vmatprep.subr.bf16.mxu1 %v658_v3 }
 0x114   :  { %598 = vmatpush3.bf16.msra.mxu1 %v597_v55 }
 0x115   :  { %599 = vmatprep.subr.bf16.mxu1 %v658_v3 }
 0x118   :  { %601 = vmatpush3.bf16.msra.mxu1 %v600_v58 }
 0x11b   :  { %542 = vmatmul.mubr.f32.vlgmr.msra.gmra.mrb[2].mxu1 %v36_v26 }
 0x1ce   :  { %v210_v63 = vpop.f32.mrb[0].mxu1 }
 0x1cf   :  { %v211_v0 = vadd.f32 %v422_v62, %v210_v63  ;;  %v508_v1 = vpop.f32.mrb[1].mxu1 }
 0x1d1   :  { %215 = vst.msk [vmem:[#allocation2] sm:$0xf] %vm214_vm2, %v211_v0 }
 0x1ee   :  { %v305_v3 = vpop.f32.mrb[2].mxu1 }
 0x1ef   :  { %v306_v4 = vadd.f32 %v424_v2, %v305_v3  ;;  %v543_v5 = vpop.f32.mrb[3].mxu1 }
 0x1f1   :  { %v309_v6 = vmax.f32 %v306_v4, 0.0 }
 0x1f3   :  { %549 = vmatmul.mubr.msk.f32.vlgmr.msra.gmra.mrb[2].mxu0 %vm140_vm1, %v309_v6 }
 0x1f4   :  { %621 = shalt.err (!%p618_p4)
}
 0x1f5   :  { %s622_s6 = scalar_lea.hbm %s900_s9, 64 }
 0x1f6   :  { %p623_p5 = scmp.ne.s32.totalorder %s900_s9, %s622_s6  ;;  %p626_p6 = scmp.lt.u32.totalorder %s622_s6, %s900_s9 }
 0x1f8   :  { %p628_p7 = pnand %p626_p6, %p623_p5 }
 0x1fa   :  { %631 = shalt.err (!%p628_p7)
}
 0x1fb   :  { %402 = dma.vmem_to_hbm [thread:$0]  %s400_s24, 64, %s900_s9, [#allocation3]   ;;  %v425_v7 = vld [vmem:[%s899_s8] ss:$0 sm:$0xff] }
 0x1fc   :  { %s662_s13 = smov [#allocation4]  }
 0x1fd   :  { %s409_s14 = sshll.u32 %s662_s13, 4  ;;  %s410_s14 = int_to_ptr.vmem [resolvable:$true] %s409_s14 }
 0x1fe   :  { %s632_s3 = scalar_lea.vmem %s410_s14, 64  ;;  %p637_p9 = scmp.lt.s32.totalorder %s410_s14, %s410_s14 }
 0x1ff   :  { %p633_p8 = scmp.ne.s32.totalorder %s410_s14, %s632_s3  ;;  %p638_p10 = scmp.lt.s32.totalorder %s632_s3, %s632_s3 }
 0x201   :  { %p639_p11 = por %p638_p10, %p637_p9 }
 0x203   :  { %p640_p12 = pnand %p639_p11, %p633_p8 }
 0x2c6   :  { %v388_v8 = vpop.f32.mrb[2].mxu0 }
 0x2c7   :  { %v389_v9 = vadd.f32 %v425_v7, %v388_v8  ;;  %v550_v10 = vpop.f32.mrb[3].mxu0 }
 0x2c9   :  { %392 = vst.msk [vmem:[#allocation4] sm:$0xf] %vm214_vm2, %v389_v9 }
 0x2ca   :  { %643 = shalt.err (!%p640_p12)
}
 0x2cb   :  { %s644_s16 = scalar_lea.hbm %s901_s10, 64 }
 0x2cc   :  { %p645_p13 = scmp.ne.s32.totalorder %s901_s10, %s644_s16  ;;  %p648_p0 = scmp.lt.u32.totalorder %s644_s16, %s901_s10 }
 0x2ce   :  { %p650_p1 = pnand %p648_p0, %p645_p13 }
 0x2d0   :  { %653 = shalt.err (!%p650_p1)
}
 0x2d1   :  { %412 = dma.vmem_to_hbm [thread:$0]  %s410_s14, 64, %s901_s10, [#allocation5]  }
 0x2d2   :  { %654 = dma.done.wait [#allocation3], 64  }
 0x2d3   :  { %655 = vsyncadd [#allocation3], 4294967232 }
 0x2d4   :  { %656 = dma.done.wait [#allocation5], 64  }
 0x2d5   :  { %657 = vsyncadd [#allocation5], 4294967232 }
 0x2d6   :  { %419 = vsyncpa [#allocation3], 1 }
 0x2d7   :  { %420 = vsyncpa [#allocation5], 1 }

</bundles_post_ra>
